<compile_context>
chip_gen: v7x
topology: tpu7x:2x2x1
jax: 0.10.0
libtpu: 0.0.40
codegen_flags: <defaults>
</compile_context>

<pallas_src>
import jax
import jax.numpy as jnp
from jax.experimental import pallas as pl
from jax.experimental.pallas import tpu as pltpu

_EPS = 1e-7
_SCALE = 25.0


def _vmem_limit_bytes():
    """Generation-aware scoped-VMEM limit: 64 MiB on v5e/v6e, 32 MiB on v7x."""
    try:
        cap = pltpu.get_tpu_info().vmem_capacity_bytes
    except Exception:
        cap = 64 * 1024 * 1024
    return min(cap // 2, 64 * 1024 * 1024)


def _choose_row_tile(n_rows, n_classes, budget_bytes):
    """Pick a row tile whose working set (~8 f32 copies of the physical block)
    stays under the VMEM budget, with no artificial upper cap."""
    c_lanes = max(128, -(-n_classes // 128) * 128)   # physical lane footprint
    per_row_bytes = 8 * 4 * c_lanes                  # dbl-buffered input + f32 temps
    tile = max(8, budget_bytes // per_row_bytes)
    n_up = -(-n_rows // 8) * 8
    tile = min(tile, n_up)
    tile = max(8, (tile // 8) * 8)
    # Balance grid steps for v7x megacore: prefer an even number (>=2) of grid
    # steps when there is more than one tile's worth of rows.  Harmless extra
    # ~0.35us step on single-TC v5e/v6e.
    if n_rows > 8:
        steps = -(-n_rows // tile)
        if steps == 1:
            steps = 2
        elif steps % 2 == 1:
            steps += 1
        tile = max(8, (-(-(-(-n_rows // steps)) // 8)) * 8)
    return tile


def _make_kernel(n_rows, row_tile):
    mask_rows = (n_rows % row_tile) != 0

    def kernel(x_ref, xy_ref, out_ref):
        x = x_ref[...].astype(jnp.float32)                     # (row_tile, C)
        x_y = xy_ref[...].astype(jnp.float32)                   # (row_tile, 1)

        # Per-row L2 norm over the class axis, fused with the 1/norm and the
        # *25 scale: 25 / (||x|| + eps)  ~=  25 * rsqrt(||x||^2 + eps^2).
        sq_sum = jnp.sum(x * x, axis=1, keepdims=True)           # (row_tile, 1)
        inv_scaled = _SCALE * jax.lax.rsqrt(sq_sum + _EPS * _EPS)
        z = x * inv_scaled                                       # |z| <= 25

        # Constant-shift log-sum-exp: 25 bounds z, so exp(z-25) in (0, 1] and
        # no per-row max pass is needed.
        e = jnp.exp(z - _SCALE)
        lse = _SCALE + jnp.log(jnp.sum(e, axis=1, keepdims=True))  # (row_tile, 1)

        # Label logit gathered in the wrapper; just rescale it here.
        picked = x_y * inv_scaled                                # z[i, y_i]

        per_row = lse - picked                                   # (row_tile, 1)
        if mask_rows:
            row = jax.lax.broadcasted_iota(jnp.int32, (row_tile, 1), 0)
            valid = (pl.program_id(0) * row_tile + row) < n_rows
            # False branch is a literal 0, so inf/nan from garbage OOB rows of
            # the last partial tile is discarded here.
            per_row = jnp.where(valid, per_row, 0.0)

        tile_sum = jnp.sum(per_row, axis=0, keepdims=True)       # (1, 1)
        out_ref[...] = tile_sum.reshape(1, 1, 1)                 # one scalar per tile

    return kernel


def logitnorm_ce(x, y, *, row_tile=None):
    """x: (N, C) logits (f32 or bf16), y: (N,) int labels -> scalar mean CE loss."""
    n, c = x.shape
    vmem_limit = _vmem_limit_bytes()
    if row_tile is None:
        row_tile = _choose_row_tile(n, c, vmem_limit)
    num_tiles = pl.cdiv(n, row_tile)

    # Gather the label logit in the wrapper (reads only N elements of x);
    # avoids a one-hot compare/select + cross-lane reduce per element.
    x_y = jnp.take_along_axis(x, y.astype(jnp.int32)[:, None], axis=1)
    x_y = x_y.astype(jnp.float32)

    partial = pl.pallas_call(
        _make_kernel(n, row_tile),
        out_shape=jax.ShapeDtypeStruct((num_tiles, 1, 1), jnp.float32),
        grid_spec=pltpu.PrefetchScalarGridSpec(
            num_scalar_prefetch=0,
            grid=(num_tiles,),
            in_specs=[
                # Last dim == full array dim: legal for any C, no padding pass.
                pl.BlockSpec((row_tile, c), lambda i: (i, 0)),
                pl.BlockSpec((row_tile, 1), lambda i: (i, 0)),
            ],
            out_specs=pl.BlockSpec((1, 1, 1), lambda i: (i, 0, 0)),
        ),
        compiler_params=pltpu.CompilerParams(
            dimension_semantics=("parallel",),
            vmem_limit_bytes=vmem_limit,
        ),
    )(x, x_y)

    # Per-tile partial sums -> mean over the true batch size N.
    return jnp.sum(partial) / n


def _reference(x, y):
    """Pure-JAX reference mirroring the PyTorch module."""
    x = x.astype(jnp.float32)
    norms = jnp.sqrt(jnp.sum(x * x, axis=1, keepdims=True)) + _EPS
    z = (x / norms) * _SCALE
    logp = jax.nn.log_softmax(z, axis=1)
    picked = jnp.take_along_axis(logp, y[:, None].astype(jnp.int32), axis=1)[:, 0]
    return -jnp.mean(picked)


if __name__ == "__main__":
    key = jax.random.PRNGKey(0)
    kx, ky, kx2, ky2 = jax.random.split(key, 4)

    # Primary small test: batch of 8 rows, 32 classes (C not a multiple of 128).
    N, C = 8, 32
    x = jax.random.normal(kx, (N, C), dtype=jnp.float32)
    y = jax.random.randint(ky, (N,), 0, C, dtype=jnp.int32)
    loss = jax.block_until_ready(logitnorm_ce(x, y))
    ref = _reference(x, y)
    assert jnp.allclose(loss, ref, atol=1e-4, rtol=1e-4), (loss, ref)

    # Ragged shapes: batch not a multiple of the row tile and classes not a
    # multiple of 128 — exercises the row-mask path and the unpadded ragged-C
    # BlockSpec.
    N2, C2 = 13, 160
    x2 = jax.random.normal(kx2, (N2, C2), dtype=jnp.float32)
    y2 = jax.random.randint(ky2, (N2,), 0, C2, dtype=jnp.int32)
    loss2 = jax.block_until_ready(logitnorm_ce(x2, y2))
    ref2 = _reference(x2, y2)
    assert jnp.allclose(loss2, ref2, atol=1e-4, rtol=1e-4), (loss2, ref2)

    print("KERNEL_OK")
</pallas_src>

<mosaic_0001>
module attributes {stable_mosaic.version = 11 : i64} {
  func.func @kernel(%arg0: i32, %arg1: memref<8x32xf32, #tpu.memory_space<vmem>>, %arg2: memref<8x1xf32, #tpu.memory_space<vmem>>, %arg3: memref<1x1x1xf32, #tpu.memory_space<vmem>>) attributes {dimension_semantics = [#tpu.dimension_semantics<parallel>], iteration_bounds = array<i64: 1>, scalar_prefetch = 0 : i64, scratch_operands = 0 : i64, tpu.core_type = #tpu.core_type<tc>, window_params = [{transform_indices = @transform_0, window_bounds = array<i64: 8, 32>}, {transform_indices = @transform_1, window_bounds = array<i64: 8, 1>}, {transform_indices = @transform_2, window_bounds = array<i64: 1, 1, 1>}]} {
    %c0 = arith.constant 0 : index
    %c0_0 = arith.constant 0 : index
    %0 = vector.load %arg1[%c0, %c0_0] : memref<8x32xf32, #tpu.memory_space<vmem>>, vector<8x32xf32>
    %c0_1 = arith.constant 0 : index
    %c0_2 = arith.constant 0 : index
    %1 = vector.load %arg2[%c0_1, %c0_2] : memref<8x1xf32, #tpu.memory_space<vmem>>, vector<8x1xf32>
    %2 = arith.mulf %0, %0 : vector<8x32xf32>
    %cst = arith.constant dense<0.000000e+00> : vector<8xf32>
    %3 = vector.multi_reduction <add>, %2, %cst [1] : vector<8x32xf32> to vector<8xf32>
    %4 = vector.shape_cast %3 : vector<8xf32> to vector<8x1xf32>
    %cst_3 = arith.constant 9.99999982E-15 : f32
    %5 = vector.broadcast %cst_3 : f32 to vector<8x1xf32>
    %6 = arith.addf %4, %5 : vector<8x1xf32>
    %7 = math.rsqrt %6 : vector<8x1xf32>
    %cst_4 = arith.constant 2.500000e+01 : f32
    %8 = vector.broadcast %cst_4 : f32 to vector<8x1xf32>
    %9 = arith.mulf %8, %7 : vector<8x1xf32>
    %10 = vector.broadcast %9 : vector<8x1xf32> to vector<8x32xf32>
    %11 = arith.mulf %0, %10 : vector<8x32xf32>
    %cst_5 = arith.constant 2.500000e+01 : f32
    %12 = vector.broadcast %cst_5 : f32 to vector<8x32xf32>
    %13 = arith.subf %11, %12 : vector<8x32xf32>
    %14 = math.exp %13 : vector<8x32xf32>
    %cst_6 = arith.constant dense<0.000000e+00> : vector<8xf32>
    %15 = vector.multi_reduction <add>, %14, %cst_6 [1] : vector<8x32xf32> to vector<8xf32>
    %16 = vector.shape_cast %15 : vector<8xf32> to vector<8x1xf32>
    %17 = math.log %16 : vector<8x1xf32>
    %cst_7 = arith.constant 2.500000e+01 : f32
    %18 = vector.broadcast %cst_7 : f32 to vector<8x1xf32>
    %19 = arith.addf %18, %17 : vector<8x1xf32>
    %20 = arith.mulf %1, %9 : vector<8x1xf32>
    %21 = arith.subf %19, %20 : vector<8x1xf32>
    %cst_8 = arith.constant dense<0.000000e+00> : vector<1xf32>
    %22 = vector.multi_reduction <add>, %21, %cst_8 [0] : vector<8x1xf32> to vector<1xf32>
    %23 = vector.shape_cast %22 : vector<1xf32> to vector<1x1xf32>
    %24 = vector.shape_cast %23 : vector<1x1xf32> to vector<1x1x1xf32>
    %c0_9 = arith.constant 0 : index
    %c0_10 = arith.constant 0 : index
    %c0_11 = arith.constant 0 : index
    %25 = vector.load %arg3[%c0_9, %c0_10, %c0_11] : memref<1x1x1xf32, #tpu.memory_space<vmem>>, vector<1x1x1xf32>
    tpu.vector_store %arg3[%c0_9, %c0_10, %c0_11], %24 {strides = array<i32>} : memref<1x1x1xf32, #tpu.memory_space<vmem>>, vector<1x1x1xf32>,
    return
  }
  func.func @transform_0(%arg0: i32) -> (i32, i32) {
    %c0_i32 = arith.constant 0 : i32
    %c0_i32_0 = arith.constant 0 : i32
    return %arg0, %c0_i32 : i32, i32
  }
  func.func @transform_1(%arg0: i32) -> (i32, i32) {
    %c0_i32 = arith.constant 0 : i32
    %c0_i32_0 = arith.constant 0 : i32
    return %arg0, %c0_i32 : i32, i32
  }
  func.func @transform_2(%arg0: i32) -> (i32, i32, i32) {
    %c0_i32 = arith.constant 0 : i32
    %c0_i32_0 = arith.constant 0 : i32
    %c0_i32_1 = arith.constant 0 : i32
    return %arg0, %c0_i32, %c0_i32_0 : i32, i32, i32
  }
}

</mosaic_0001>

<bundles_post_ra>
// kernel: tpu_custom_call.1
= control target key start
LH: loop header
LB: loop body
LE: loop exit
PB: predicated region body
PF: predicated region fallthrough
CT: control target
= control target key end

     0   :  { %vm15_vm0 = vcmask 261120   ;;  %s124_s0 = inlined_call_operand.vmem [shape: f32[8,32], index: 0, kind: input, shape index: {}]   ;;  %s125_s1 = inlined_call_operand.vmem [shape: f32[8,1], index: 1, kind: input, shape index: {}]   ;;  %s126_s2 = inlined_call_operand.hbm [shape: f32[1,1,1], index: 2, kind: output, shape index: {}]  }
   0x1   :  { %v12_v0 = vld [vmem:[%s124_s0] sm:$0xff] }
   0x2   :  { %7 = vsyncpa [#allocation3], 0  ;;  %v14_v1 = vmul.f32 %v12_v0, %v12_v0  ;;  %v13_v14 = vld [vmem:[%s125_s1] sm:$0xff]  ;;  %vm34_vm1 = vcmask 7168   ;;  %s90_s12 = smov [#allocation2]   ;;  %vm42_vm2 = vcmask 0  }
   0x3   :  { %s50_s13 = sshll.u32 %s90_s12, 4  ;;  %s51_s13 = int_to_ptr.vmem [resolvable:$true] %s50_s13 }
   0x4   :  { %v16_v2 = vsel %vm15_vm0, %v14_v1, 0.0  ;;  %s66_s14 = scalar_lea.vmem %s51_s13, 16  ;;  %s70_s1 = scalar_lea.vmem %s51_s13, 32 }
   0x5   :  { %17 = vadd.xlane.f32.xlu0 %v16_v2  ;;  %p67_p0 = scmp.ne.s32.totalorder %s51_s13, %s66_s14  ;;  %p71_p1 = scmp.lt.s32.totalorder %s51_s13, %s51_s13 }
   0x6   :  { %p72_p2 = scmp.lt.s32.totalorder %s70_s1, %s66_s14 }
   0x8   :  { %p73_p3 = por %p72_p2, %p71_p1 }
   0xa   :  { %p74_p4 = pnand %p73_p3, %p67_p0 }
  0x92   :  { %v18_v3 = vpop.xlane.xlu0 %17 }
  0x93   :  { %v19_v4 = vadd.f32 1e-14, %v18_v3 }
  0x95   :  { %60 = vrsqrt.f32 %v19_v4 }
  0x9f   :  { %v61_v5 = vpop.eup %60 }
  0xa0   :  { %v21_v6 = vmul.f32 25.0, %v61_v5 }
  0xa2   :  { %v22_v7 = vmul.f32 %v21_v6, %v12_v0  ;;  %v32_v16 = vmul.f32 %v21_v6, %v13_v14 }
  0xa4   :  { %v58_v8 = vadd.f32 -25.0, %v22_v7 }
  0xa6   :  { %v24_v9 = vmul.f32 1.442695, %v58_v8 }
  0xa8   :  { %62 = vpow2.f32 %v24_v9 }
  0xb2   :  { %v63_v10 = vpop.eup %62 }
  0xb3   :  { %v26_v11 = vsel %vm15_vm0, %v63_v10, 0.0 }
  0xb4   :  { %27 = vadd.xlane.f32.xlu0 %v26_v11 }
 0x141   :  { %v28_v12 = vpop.xlane.xlu0 %27 }
 0x142   :  { %64 = vlog2.f32 %v28_v12 }
 0x14c   :  { %v65_v13 = vpop.eup %64 }
 0x14d   :  { %v30_v15 = vmul.f32 0.6931472, %v65_v13 }
 0x14f   :  { %v31_v17 = vadd.f32 25.0, %v30_v15 }
 0x151   :  { %v33_v18 = vsub.f32 %v31_v17, %v32_v16 }
 0x153   :  { %v35_v19 = vsel %vm34_vm1, %v33_v18, 0.0 }
 0x154   :  { %v36_v20 = vrot.slane %v35_v19, 4 }
 0x156   :  { %v37_v21 = vadd.f32 %v36_v20, %v35_v19 }
 0x158   :  { %v38_v22 = vrot.slane %v37_v21, 2 }
 0x15a   :  { %v39_v23 = vadd.f32 %v38_v22, %v37_v21 }
 0x15c   :  { %v40_v24 = vrot.slane %v39_v23, 1 }
 0x15e   :  { %v41_v25 = vadd.f32 %v40_v24, %v39_v23 }
 0x160   :  { %43 = vst.msk [vmem:[#allocation2] sm:$0x1] %vm42_vm2, %v41_v25 }
 0x161   :  { %77 = shalt.err (!%p74_p4)
}
 0x162   :  { %s78_s17 = scalar_lea.hbm %s126_s2, 16 }
 0x163   :  { %p79_p5 = scmp.ne.s32.totalorder %s126_s2, %s78_s17  ;;  %p82_p6 = scmp.lt.u32.totalorder %s78_s17, %s126_s2 }
 0x165   :  { %p84_p7 = pnand %p82_p6, %p79_p5 }
 0x167   :  { %87 = shalt.err (!%p84_p7)
}
 0x168   :  { %53 = dma.vmem_to_hbm [thread:$0]  %s51_s13, 16, %s126_s2, [#allocation3]  }
 0x169   :  { %88 = dma.done.wait [#allocation3], 16  }
 0x16a   :  { %89 = vsyncadd [#allocation3], 4294967280 }
 0x16b   :  { %57 = vsyncpa [#allocation3], 1 }

</bundles_post_ra>
